<compile_context>
chip_gen: v7x
topology: tpu7x:2x2x1
jax: 0.10.0
libtpu: 0.0.40
codegen_flags: <defaults>
</compile_context>

<pallas_src>
from math import ceil

import jax
import jax.numpy as jnp
from jax.scipy.linalg import block_diag
from jax.experimental import pallas as pl
from jax.experimental.pallas import tpu as pltpu


def _round_up(x, m):
    return (x + m - 1) // m * m


# ----------------------------------------------------------------------------
# Fused kernel: block-diagonal per-view MLPs -> attention fusion -> classifier
# ----------------------------------------------------------------------------
def make_mvib_kernel(layout, n_view, feat_dim, class_num, out_width):
    D, C = feat_dim, class_num

    def kernel(x_ref, p_ref, o_ref):
        def p(name):
            r0, nr, nc = layout[name]          # static Python ints -> free views
            return p_ref[r0:r0 + nr, 0:nc]

        x = x_ref[...]                         # (B, sum_d) lane-concat inputs

        # ---- all per-view MLPs as 3 block-diagonal matmuls ----
        h = jnp.maximum(
            jnp.dot(x, p("w1"), preferred_element_type=jnp.float32) + p("b1"), 0.0)
        h = jnp.maximum(
            jnp.dot(h, p("w2"), preferred_element_type=jnp.float32) + p("b2"), 0.0)
        # Dropout(p=0.5) is identity in eval mode.
        f = jnp.maximum(
            jnp.dot(h, p("w3"), preferred_element_type=jnp.float32) + p("b3"), 0.0)
        # f: (B, n_view*D); lanes [v*D:(v+1)*D] hold view v's features.

        # ---- Bahdanau attention, all views at once (query == values == z) ----
        # W1(z) + W2(z) was folded host-side into one block-diagonal weight.
        ha = jnp.tanh(
            jnp.dot(f, p("wsum"), preferred_element_type=jnp.float32) + p("bsum"))
        # V projection + per-view lane reduction as one tiny selector matmul.
        s = jnp.dot(ha * p("vw"), p("sel"),
                    preferred_element_type=jnp.float32) + p("vb")      # (B, n_view)

        # exact softmax over views (numerical parity with torch.softmax)
        m = jnp.max(s, axis=-1, keepdims=True)
        e = jnp.exp(s - m)
        alphas = e / jnp.sum(e, axis=-1, keepdims=True)                # (B, n_view)

        # context = sum_v alpha_v * feat_v, without lane-sparse slicing:
        a_tiled = jnp.dot(alphas, p("expand"),
                          preferred_element_type=jnp.float32)          # (B, n_view*D)
        ctx = jnp.dot(f * a_tiled, p("fold"),
                      preferred_element_type=jnp.float32)              # (B, D)

        # ---- classifier ----
        out = jnp.dot(ctx, p("wc"),
                      preferred_element_type=jnp.float32) + p("bc")    # (B, C)

        # ---- single lane-dense, unmasked full-block store ----
        pieces = [out, ctx, f]
        pad = out_width - (C + D + n_view * D)
        if pad > 0:
            pieces.append(jnp.zeros((x.shape[0], pad), jnp.float32))
        o_ref[...] = jnp.concatenate(pieces, axis=-1).astype(o_ref.dtype)

    return kernel


# ----------------------------------------------------------------------------
# Wrapper: one-time host/XLA prep (block-diag fold + one param slab) + 1 call
# ----------------------------------------------------------------------------
def mvib_forward(inputs, params):
    mlp_params = params["mlps"]
    w1a, b1a, w2a, b2a, vw, vb = params["attn"]
    wc, bc = params["cls"]
    assert len(inputs) == len(mlp_params)

    n_view = len(inputs)
    B = inputs[0].shape[0]
    C, D = wc.shape                      # classifier: (class_num, class_num*10)
    f32 = jnp.float32

    # lane-concatenated activations: one input buffer for all views
    x = jnp.concatenate([xi.astype(f32) for xi in inputs], axis=-1)

    # block-diagonal fold of the per-view MLP weights ((in, out) layout)
    w1bd = block_diag(*[p[0].T for p in mlp_params]).astype(f32)
    b1c = jnp.concatenate([p[1] for p in mlp_params])[None, :].astype(f32)
    w2bd = block_diag(*[p[2].T for p in mlp_params]).astype(f32)
    b2c = jnp.concatenate([p[3] for p in mlp_params])[None, :].astype(f32)
    w3bd = block_diag(*[p[4].T for p in mlp_params]).astype(f32)
    b3c = jnp.concatenate([p[5] for p in mlp_params])[None, :].astype(f32)

    # attention: query == values == z  =>  W1(z)+W2(z) = z @ (W1+W2)^T + (b1+b2)
    wsum = (w1a + w2a).T.astype(f32)                          # (D, D)
    wsum_bd = block_diag(*([wsum] * n_view))                  # (n_view*D, n_view*D)
    bsum_t = jnp.tile((b1a + b2a)[None, :].astype(f32), (1, n_view))
    vw_t = jnp.tile(vw.reshape(1, D).astype(f32), (1, n_view))
    vb_m = vb.reshape(1, 1).astype(f32)

    # view <-> lane-block bookkeeping matrices (exact 0/1 selectors)
    sel = jnp.repeat(jnp.eye(n_view, dtype=f32), D, axis=0)   # (n_view*D, n_view)
    expand = sel.T                                            # (n_view, n_view*D)
    fold = jnp.tile(jnp.eye(D, dtype=f32), (n_view, 1))       # (n_view*D, D)

    wct = wc.T.astype(f32)                                    # (D, C)
    bcm = bc[None, :].astype(f32)                             # (1, C)

    mats = [
        ("w1", w1bd), ("b1", b1c), ("w2", w2bd), ("b2", b2c),
        ("w3", w3bd), ("b3", b3c), ("wsum", wsum_bd), ("bsum", bsum_t),
        ("vw", vw_t), ("vb", vb_m), ("sel", sel), ("expand", expand),
        ("fold", fold), ("wc", wct), ("bc", bcm),
    ]
    lane_w = _round_up(max(int(m.shape[1]) for _, m in mats), 128)
    layout = {}
    row = 0
    for name, m in mats:
        layout[name] = (row, int(m.shape[0]), int(m.shape[1]))
        row += _round_up(int(m.shape[0]), 8)        # 8-sublane aligned starts
    total_rows = _round_up(row, 8)

    slab = jnp.zeros((total_rows, lane_w), f32)
    for name, m in mats:
        r0, nr, nc = layout[name]
        slab = slab.at[r0:r0 + nr, 0:nc].set(m)

    # coalesced, lane-dense output slab: [logits | context | feat_0 .. feat_{V-1}]
    out_width = _round_up(C + D + n_view * D, 128)

    # ---- advisory cost estimate (plain Python ints, no jnp) ----
    sum_d = int(x.shape[1])
    sum_h1 = int(w1bd.shape[1])
    sum_h2 = int(w2bd.shape[1])
    nvd = n_view * D
    flops = 2 * B * (sum_d * sum_h1 + sum_h1 * sum_h2 + sum_h2 * nvd
                     + nvd * nvd + nvd * n_view + n_view * nvd
                     + nvd * D + D * C)
    transcendentals = B * (nvd + n_view)            # tanh + exp
    bytes_accessed = 4 * (B * sum_d + total_rows * lane_w + B * out_width)

    # grid=(1,): single step, nothing to pipeline; default double-buffering only
    # duplicates a ~256 KiB slab, so it is left alone.
    # TODO(synk): for large batches, tile B on a "parallel" grid axis (needed to
    # use both TensorCores on v7x and to bound VMEM residency at 64 MiB).
    slab_out = pl.pallas_call(
        make_mvib_kernel(layout, n_view, D, C, out_width),
        grid=(1,),
        in_specs=[
            pl.BlockSpec((B, sum_d), lambda i: (0, 0)),
            pl.BlockSpec((total_rows, lane_w), lambda i: (0, 0)),
        ],
        out_specs=pl.BlockSpec((B, out_width), lambda i: (0, 0)),
        out_shape=jax.ShapeDtypeStruct((B, out_width), f32),
        compiler_params=pltpu.CompilerParams(
            dimension_semantics=("arbitrary",)),
        cost_estimate=pl.CostEstimate(
            flops=flops, transcendentals=transcendentals,
            bytes_accessed=bytes_accessed),
    )(x, slab)

    out = slab_out[:, :C]
    context = slab_out[:, C:C + D]
    base = C + D
    features = [slab_out[:, base + v * D: base + (v + 1) * D]
                for v in range(n_view)]
    return inputs, out, context, features


# ----------------------------------------------------------------------------
# Pure-JAX reference (mirrors the PyTorch MVIB.forward, eval mode)
# ----------------------------------------------------------------------------
def mvib_reference(inputs, params):
    feats = []
    for xv, (w1, b1, w2, b2, w3, b3) in zip(inputs, params["mlps"]):
        h = jax.nn.relu(xv @ w1.T + b1)
        h = jax.nn.relu(h @ w2.T + b2)
        feats.append(jax.nn.relu(h @ w3.T + b3))
    w1a, b1a, w2a, b2a, vw, vb = params["attn"]
    z = jnp.stack(feats, axis=1)                                       # (B, V, D)
    scores = jnp.tanh(z @ w1a.T + b1a + z @ w2a.T + b2a) @ vw.T + vb   # (B, V, 1)
    alphas = jax.nn.softmax(scores[..., 0], axis=-1)                   # (B, V)
    ctx = jnp.einsum("bv,bvd->bd", alphas, z)
    wc, bc = params["cls"]
    out = ctx @ wc.T + bc
    return out, ctx, feats


# ----------------------------------------------------------------------------
# Deterministic parameter init (PyTorch-style uniform(+-1/sqrt(fan_in)))
# ----------------------------------------------------------------------------
def init_linear(key, out_f, in_f):
    kw, kb = jax.random.split(key)
    bound = 1.0 / (in_f ** 0.5)
    w = jax.random.uniform(kw, (out_f, in_f), jnp.float32, -bound, bound)
    b = jax.random.uniform(kb, (out_f,), jnp.float32, -bound, bound)
    return w, b


def init_mlp_params(key, in_dim, class_num):
    h1 = ceil(in_dim * 1.2)
    h2 = ceil(in_dim * 0.5)
    out = ceil(class_num * 10)
    k1, k2, k3 = jax.random.split(key, 3)
    w1, b1 = init_linear(k1, h1, in_dim)
    w2, b2 = init_linear(k2, h2, h1)
    w3, b3 = init_linear(k3, out, h2)
    return (w1, b1, w2, b2, w3, b3)


if __name__ == "__main__":
    key = jax.random.PRNGKey(0)
    input_dims = [32, 48]
    class_num = 3
    batch = 4
    D = class_num * 10                     # classifier / attention hidden dim

    n_view = len(input_dims)
    keys = jax.random.split(key, n_view * 2 + 4)

    inputs = [
        jax.random.normal(keys[i], (batch, input_dims[i]), jnp.float32)
        for i in range(n_view)
    ]
    mlp_params = [
        init_mlp_params(keys[n_view + i], input_dims[i], class_num)
        for i in range(n_view)
    ]
    w1, b1 = init_linear(keys[-4], D, D)
    w2, b2 = init_linear(keys[-3], D, D)
    vw, vb = init_linear(keys[-2], 1, D)
    wc, bc = init_linear(keys[-1], class_num, D)

    params = {
        "mlps": mlp_params,
        "attn": (w1, b1, w2, b2, vw, vb),
        "cls": (wc, bc),
    }

    inputs_out, out, context, features = mvib_forward(inputs, params)
    jax.block_until_ready(out)
    jax.block_until_ready(context)
    jax.block_until_ready(features)

    assert out.shape == (batch, class_num)
    assert context.shape == (batch, D)
    assert all(f.shape == (batch, D) for f in features)

    # numerical self-check against the pure-JAX reference (loose tol: default
    # TPU matmul precision + the exact W1+W2 pre-fold differ in rounding order)
    ref_out, ref_ctx, ref_feats = mvib_reference(inputs, params)
    assert jnp.allclose(out, ref_out, atol=5e-3, rtol=5e-2)
    assert jnp.allclose(context, ref_ctx, atol=5e-3, rtol=5e-2)
    for f, rf in zip(features, ref_feats):
        assert jnp.allclose(f, rf, atol=5e-3, rtol=5e-2)

    print("KERNEL_OK")
</pallas_src>

<mosaic_0001>
module attributes {stable_mosaic.version = 11 : i64} {
  func.func @kernel(%arg0: i32, %arg1: memref<4x80xf32, #tpu.memory_space<vmem>>, %arg2: memref<512x128xf32, #tpu.memory_space<vmem>>, %arg3: memref<4x128xf32, #tpu.memory_space<vmem>>) attributes {dimension_semantics = [#tpu.dimension_semantics<arbitrary>], iteration_bounds = array<i64: 1>, scalar_prefetch = 0 : i64, scratch_operands = 0 : i64, tpu.core_type = #tpu.core_type<tc>, window_params = [{pipeline_mode = #tpu.pipeline_mode<synchronous>, transform_indices = @transform_0, window_bounds = array<i64: 4, 80>}, {pipeline_mode = #tpu.pipeline_mode<synchronous>, transform_indices = @transform_1, window_bounds = array<i64: 512, 128>}, {pipeline_mode = #tpu.pipeline_mode<synchronous>, transform_indices = @transform_2, window_bounds = array<i64: 4, 128>}]} {
    %c0 = arith.constant 0 : index
    %c0_0 = arith.constant 0 : index
    %0 = vector.load %arg1[%c0, %c0_0] : memref<4x80xf32, #tpu.memory_space<vmem>>, vector<4x80xf32>
    %c0_1 = arith.constant 0 : index
    %c0_2 = arith.constant 0 : index
    %1 = vector.load %arg2[%c0_1, %c0_2] : memref<512x128xf32, #tpu.memory_space<vmem>>, vector<80x97xf32>
    %cst = arith.constant dense<0.000000e+00> : vector<4x97xf32>
    %2 = tpu.matmul %0, %1, %cst {dimension_numbers = #tpu.dot_dimension_numbers<[1], [0], [0], [1], [0, 0, 1, 1], [], []>} : vector<4x80xf32>, vector<80x97xf32>, vector<4x97xf32> -> vector<4x97xf32>
    %c80 = arith.constant 80 : index
    %c0_3 = arith.constant 0 : index
    %3 = vector.load %arg2[%c80, %c0_3] : memref<512x128xf32, #tpu.memory_space<vmem>>, vector<1x97xf32>
    %4 = vector.broadcast %3 : vector<1x97xf32> to vector<4x97xf32>
    %5 = arith.addf %2, %4 : vector<4x97xf32>
    %cst_4 = arith.constant 0.000000e+00 : f32
    %6 = vector.broadcast %cst_4 : f32 to vector<4x97xf32>
    %7 = arith.maximumf %5, %6 : vector<4x97xf32>
    %c88 = arith.constant 88 : index
    %c0_5 = arith.constant 0 : index
    %8 = vector.load %arg2[%c88, %c0_5] : memref<512x128xf32, #tpu.memory_space<vmem>>, vector<97x40xf32>
    %cst_6 = arith.constant dense<0.000000e+00> : vector<4x40xf32>
    %9 = tpu.matmul %7, %8, %cst_6 {dimension_numbers = #tpu.dot_dimension_numbers<[1], [0], [0], [1], [0, 0, 1, 1], [], []>} : vector<4x97xf32>, vector<97x40xf32>, vector<4x40xf32> -> vector<4x40xf32>
    %c192 = arith.constant 192 : index
    %c0_7 = arith.constant 0 : index
    %10 = vector.load %arg2[%c192, %c0_7] : memref<512x128xf32, #tpu.memory_space<vmem>>, vector<1x40xf32>
    %11 = vector.broadcast %10 : vector<1x40xf32> to vector<4x40xf32>
    %12 = arith.addf %9, %11 : vector<4x40xf32>
    %cst_8 = arith.constant 0.000000e+00 : f32
    %13 = vector.broadcast %cst_8 : f32 to vector<4x40xf32>
    %14 = arith.maximumf %12, %13 : vector<4x40xf32>
    %c200 = arith.constant 200 : index
    %c0_9 = arith.constant 0 : index
    %15 = vector.load %arg2[%c200, %c0_9] : memref<512x128xf32, #tpu.memory_space<vmem>>, vector<40x60xf32>
    %cst_10 = arith.constant dense<0.000000e+00> : vector<4x60xf32>
    %16 = tpu.matmul %14, %15, %cst_10 {dimension_numbers = #tpu.dot_dimension_numbers<[1], [0], [0], [1], [0, 0, 1, 1], [], []>} : vector<4x40xf32>, vector<40x60xf32>, vector<4x60xf32> -> vector<4x60xf32>
    %c240 = arith.constant 240 : index
    %c0_11 = arith.constant 0 : index
    %17 = vector.load %arg2[%c240, %c0_11] : memref<512x128xf32, #tpu.memory_space<vmem>>, vector<1x60xf32>
    %18 = vector.broadcast %17 : vector<1x60xf32> to vector<4x60xf32>
    %19 = arith.addf %16, %18 : vector<4x60xf32>
    %cst_12 = arith.constant 0.000000e+00 : f32
    %20 = vector.broadcast %cst_12 : f32 to vector<4x60xf32>
    %21 = arith.maximumf %19, %20 : vector<4x60xf32>
    %c248 = arith.constant 248 : index
    %c0_13 = arith.constant 0 : index
    %22 = vector.load %arg2[%c248, %c0_13] : memref<512x128xf32, #tpu.memory_space<vmem>>, vector<60x60xf32>
    %cst_14 = arith.constant dense<0.000000e+00> : vector<4x60xf32>
    %23 = tpu.matmul %21, %22, %cst_14 {dimension_numbers = #tpu.dot_dimension_numbers<[1], [0], [0], [1], [0, 0, 1, 1], [], []>} : vector<4x60xf32>, vector<60x60xf32>, vector<4x60xf32> -> vector<4x60xf32>
    %c312 = arith.constant 312 : index
    %c0_15 = arith.constant 0 : index
    %24 = vector.load %arg2[%c312, %c0_15] : memref<512x128xf32, #tpu.memory_space<vmem>>, vector<1x60xf32>
    %25 = vector.broadcast %24 : vector<1x60xf32> to vector<4x60xf32>
    %26 = arith.addf %23, %25 : vector<4x60xf32>
    %27 = math.tanh %26 : vector<4x60xf32>
    %c320 = arith.constant 320 : index
    %c0_16 = arith.constant 0 : index
    %28 = vector.load %arg2[%c320, %c0_16] : memref<512x128xf32, #tpu.memory_space<vmem>>, vector<1x60xf32>
    %29 = vector.broadcast %28 : vector<1x60xf32> to vector<4x60xf32>
    %30 = arith.mulf %27, %29 : vector<4x60xf32>
    %c336 = arith.constant 336 : index
    %c0_17 = arith.constant 0 : index
    %31 = vector.load %arg2[%c336, %c0_17] : memref<512x128xf32, #tpu.memory_space<vmem>>, vector<60x2xf32>
    %cst_18 = arith.constant dense<0.000000e+00> : vector<4x2xf32>
    %32 = tpu.matmul %30, %31, %cst_18 {dimension_numbers = #tpu.dot_dimension_numbers<[1], [0], [0], [1], [0, 0, 1, 1], [], []>} : vector<4x60xf32>, vector<60x2xf32>, vector<4x2xf32> -> vector<4x2xf32>
    %c328 = arith.constant 328 : index
    %c0_19 = arith.constant 0 : index
    %33 = vector.load %arg2[%c328, %c0_19] : memref<512x128xf32, #tpu.memory_space<vmem>>, vector<1x1xf32>
    %34 = vector.broadcast %33 : vector<1x1xf32> to vector<4x2xf32>
    %35 = arith.addf %32, %34 : vector<4x2xf32>
    %cst_20 = arith.constant dense<0xFF800000> : vector<4xf32>
    %36 = vector.multi_reduction <maximumf>, %35, %cst_20 [1] : vector<4x2xf32> to vector<4xf32>
    %37 = vector.shape_cast %36 : vector<4xf32> to vector<4x1xf32>
    %38 = vector.broadcast %37 : vector<4x1xf32> to vector<4x2xf32>
    %39 = arith.subf %35, %38 : vector<4x2xf32>
    %40 = math.exp %39 : vector<4x2xf32>
    %cst_21 = arith.constant dense<0.000000e+00> : vector<4xf32>
    %41 = vector.multi_reduction <add>, %40, %cst_21 [1] : vector<4x2xf32> to vector<4xf32>
    %42 = vector.shape_cast %41 : vector<4xf32> to vector<4x1xf32>
    %43 = vector.broadcast %42 : vector<4x1xf32> to vector<4x2xf32>
    %44 = arith.divf %40, %43 : vector<4x2xf32>
    %c400 = arith.constant 400 : index
    %c0_22 = arith.constant 0 : index
    %45 = vector.load %arg2[%c400, %c0_22] : memref<512x128xf32, #tpu.memory_space<vmem>>, vector<2x60xf32>
    %cst_23 = arith.constant dense<0.000000e+00> : vector<4x60xf32>
    %46 = tpu.matmul %44, %45, %cst_23 {dimension_numbers = #tpu.dot_dimension_numbers<[1], [0], [0], [1], [0, 0, 1, 1], [], []>} : vector<4x2xf32>, vector<2x60xf32>, vector<4x60xf32> -> vector<4x60xf32>
    %47 = arith.mulf %21, %46 : vector<4x60xf32>
    %c408 = arith.constant 408 : index
    %c0_24 = arith.constant 0 : index
    %48 = vector.load %arg2[%c408, %c0_24] : memref<512x128xf32, #tpu.memory_space<vmem>>, vector<60x30xf32>
    %cst_25 = arith.constant dense<0.000000e+00> : vector<4x30xf32>
    %49 = tpu.matmul %47, %48, %cst_25 {dimension_numbers = #tpu.dot_dimension_numbers<[1], [0], [0], [1], [0, 0, 1, 1], [], []>} : vector<4x60xf32>, vector<60x30xf32>, vector<4x30xf32> -> vector<4x30xf32>
    %c472 = arith.constant 472 : index
    %c0_26 = arith.constant 0 : index
    %50 = vector.load %arg2[%c472, %c0_26] : memref<512x128xf32, #tpu.memory_space<vmem>>, vector<30x3xf32>
    %cst_27 = arith.constant dense<0.000000e+00> : vector<4x3xf32>
    %51 = tpu.matmul %49, %50, %cst_27 {dimension_numbers = #tpu.dot_dimension_numbers<[1], [0], [0], [1], [0, 0, 1, 1], [], []>} : vector<4x30xf32>, vector<30x3xf32>, vector<4x3xf32> -> vector<4x3xf32>
    %c504 = arith.constant 504 : index
    %c0_28 = arith.constant 0 : index
    %52 = vector.load %arg2[%c504, %c0_28] : memref<512x128xf32, #tpu.memory_space<vmem>>, vector<1x3xf32>
    %53 = vector.broadcast %52 : vector<1x3xf32> to vector<4x3xf32>
    %54 = arith.addf %51, %53 : vector<4x3xf32>
    %cst_29 = arith.constant 0.000000e+00 : f32
    %55 = vector.broadcast %cst_29 : f32 to vector<4x35xf32>
    %56 = tpu.concatenate %54, %49, %21, %55 in 1 : vector<4x3xf32>, vector<4x30xf32>, vector<4x60xf32>, vector<4x35xf32> -> vector<4x128xf32>
    %c0_30 = arith.constant 0 : index
    %c0_31 = arith.constant 0 : index
    %57 = vector.load %arg3[%c0_30, %c0_31] : memref<4x128xf32, #tpu.memory_space<vmem>>, vector<4x128xf32>
    tpu.vector_store %arg3[%c0_30, %c0_31], %56 {strides = array<i32>} : memref<4x128xf32, #tpu.memory_space<vmem>>, vector<4x128xf32>,
    return
  }
  func.func @transform_0(%arg0: i32) -> (i32, i32) {
    %c0_i32 = arith.constant 0 : i32
    %c0_i32_0 = arith.constant 0 : i32
    %c0_i32_1 = arith.constant 0 : i32
    return %c0_i32, %c0_i32_0 : i32, i32
  }
  func.func @transform_1(%arg0: i32) -> (i32, i32) {
    %c0_i32 = arith.constant 0 : i32
    %c0_i32_0 = arith.constant 0 : i32
    %c0_i32_1 = arith.constant 0 : i32
    return %c0_i32, %c0_i32_0 : i32, i32
  }
  func.func @transform_2(%arg0: i32) -> (i32, i32) {
    %c0_i32 = arith.constant 0 : i32
    %c0_i32_0 = arith.constant 0 : i32
    %c0_i32_1 = arith.constant 0 : i32
    return %c0_i32, %c0_i32_0 : i32, i32
  }
}

</mosaic_0001>

<bundles_post_ra>
// kernel: tpu_custom_call.1
= control target key start
LH: loop header
LB: loop body
LE: loop exit
PB: predicated region body
PF: predicated region fallthrough
CT: control target
= control target key end

     0   :  { %7 = vsyncpa [#allocation3], 0  ;;  %s1324_s0 = inlined_call_operand.hbm [shape: f32[4,80], index: 0, kind: input, shape index: {}]   ;;  %s1325_s1 = inlined_call_operand.hbm [shape: f32[512,128], index: 1, kind: input, shape index: {}]   ;;  %s1326_s2 = inlined_call_operand.hbm [shape: f32[4,128], index: 2, kind: output, shape index: {}]  }
   0x1   :  { %8 = vsyncpa [#allocation6], 0 }
   0x2   :  { %9 = vsyncpa [#allocation4], 0  ;;  %s1189_s9 = smov [#allocation2]   ;;  %s1190_s11 = smov [#allocation5]  }
   0x3   :  { %s16_s10 = sshll.u32 %s1189_s9, 4  ;;  %s25_s12 = sshll.u32 %s1190_s11, 4  ;;  %s17_s10 = int_to_ptr.vmem [resolvable:$true] %s16_s10  ;;  %s1215_s12 = int_to_ptr.vmem [resolvable:$true] %s25_s12 }
   0x4   :  { %s1117_s15 = scalar_lea.hbm %s1324_s0, 64 }
   0x5   :  { %p1118_p0 = scmp.ne.s32.totalorder %s1324_s0, %s1117_s15  ;;  %p1121_p1 = scmp.lt.u32.totalorder %s1117_s15, %s1324_s0 }
   0x7   :  { %p1123_p2 = pnand %p1121_p1, %p1118_p0 }
   0x9   :  { %1126 = shalt.err (!%p1123_p2)
}
   0xa   :  { %s1127_s20 = scalar_lea.vmem %s17_s10, 64  ;;  %p1132_p4 = scmp.lt.s32.totalorder %s17_s10, %s17_s10 }
   0xb   :  { %p1128_p3 = scmp.ne.s32.totalorder %s17_s10, %s1127_s20  ;;  %p1133_p5 = scmp.lt.s32.totalorder %s1127_s20, %s1127_s20 }
   0xd   :  { %p1134_p6 = por %p1133_p5, %p1132_p4 }
   0xf   :  { %p1135_p7 = pnand %p1134_p6, %p1128_p3 }
  0x11   :  { %1138 = shalt.err (!%p1135_p7)
}
  0x12   :  { %19 = dma.hbm_to_vmem [thread:$0]  %s1324_s0, 64, %s17_s10, [#allocation3]  }
  0x13   :  { %s1139_s25 = scalar_lea.hbm %s1325_s1, 8192 }
  0x14   :  { %p1140_p8 = scmp.ne.s32.totalorder %s1325_s1, %s1139_s25  ;;  %p1143_p9 = scmp.lt.u32.totalorder %s1139_s25, %s1325_s1 }
  0x16   :  { %p1145_p10 = pnand %p1143_p9, %p1140_p8 }
  0x18   :  { %1148 = shalt.err (!%p1145_p10)
}
  0x19   :  { %s1149_s30 = scalar_lea.vmem %s1215_s12, 8192  ;;  %p1154_p12 = scmp.lt.s32.totalorder %s1215_s12, %s1215_s12 }
  0x1a   :  { %p1150_p11 = scmp.ne.s32.totalorder %s1215_s12, %s1149_s30  ;;  %p1155_p13 = scmp.lt.s32.totalorder %s1149_s30, %s1149_s30 }
  0x1c   :  { %p1156_p0 = por %p1155_p13, %p1154_p12 }
  0x1e   :  { %p1157_p1 = pnand %p1156_p0, %p1150_p11 }
  0x20   :  { %1160 = shalt.err (!%p1157_p1)
}
  0x21   :  { %s1191_s0 = smov 128   ;;  %s1192_s3 = smov 8  }
  0x22   :  { %31 = dma.hbm_to_vmem [thread:$0]  %s1325_s1, 8192, %s1215_s12, [#allocation6], %s1191_s0, %s1191_s0, %s1192_s3  }
  0x23   :  { %1183 = dma.done.wait [#allocation3], 64  }
  0x24   :  { %1184 = vsyncadd [#allocation3], 4294967232 }
  0x25   :  { %1185 = dma.done.wait [#allocation6], 8192  }
  0x26   :  { %1186 = vsyncadd [#allocation6], 4294959104  ;;  %v1193_v0 = vmov 0.0|0.0   ;;  %vm1194_vm0 = vmmov 0   ;;  %v1195_v1 = vmov 0.0   ;;  %v39_v2 = vld [vmem:[#allocation5] sm:$0xff] }
  0x27   :  { %1013 = vmatprep.subr.bf16.mxu0 %v1193_v0  ;;  %895 = vmatprep.mubr.msk.f32.mxu0 %vm1194_vm0, %v1195_v1  ;;  %v40_v3 = vld [vmem:[#allocation5 + $0x8] sm:$0xff]  ;;  %v41_v4 = vld [vmem:[#allocation5 + $0x10] sm:$0xff]  ;;  %v42_v6 = vld [vmem:[#allocation5 + $0x18] sm:$0xff]  ;;  %vm54_vm1 = vcmask 654336   ;;  %vm151_vm2 = vcmask 1040384   ;;  %vm147_vm3 = vcmask 793600  }
  0x28   :  { %1028 = vmatprep.subr.bf16.mxu1 %v1193_v0  ;;  %924 = vmatprep.mubr.msk.f32.mxu1 %vm1194_vm0, %v1195_v1  ;;  %v1014_v5 = vpack.c.bf16 %v40_v3, %v39_v2  ;;  %v1017_v7 = vpack.c.bf16 %v42_v6, %v41_v4  ;;  %v43_v8 = vld [vmem:[#allocation5 + $0x20] sm:$0xff]  ;;  %v44_v9 = vld [vmem:[#allocation5 + $0x28] sm:$0xff]  ;;  %v129_v10 = vld [vmem:[#allocation5 + $0x58] sm:$0xff]  ;;  %vm236_vm4 = vcmask 326656   ;;  %vm328_vm5 = vcmask 1043456   ;;  %s1197_s6 = smov 3  }
  0x29   :  { %v130_v11 = vld [vmem:[#allocation5 + $0x60] sm:$0xff]  ;;  %v131_v12 = vld [vmem:[#allocation5 + $0x68] sm:$0xff]  ;;  %v132_v13 = vld [vmem:[#allocation5 + $0x70] sm:$0xff]  ;;  %v1020_v15 = vpack.c.bf16 %v44_v9, %v43_v8  ;;  %vm1196_vm6 = vmmov 1   ;;  %vm324_vm8 = vcmask 490496   ;;  %vm498_vm9 = vcmask 11264  }
  0x2a   :  { %1015 = vmatpush3.bf16.msra.mxu0 %v1014_v5  ;;  %v1029_v14 = vpack.c.bf16 %v130_v11, %v129_v10  ;;  %v45_v16 = vld [vmem:[#allocation5 + $0x30] sm:$0xff]  ;;  %v1032_v17 = vpack.c.bf16 %v132_v13, %v131_v12  ;;  %v46_v18 = vld [vmem:[#allocation5 + $0x38] sm:$0xff]  ;;  %v134_v20 = vld [vmem:[#allocation5 + $0x80] sm:$0xff]  ;;  %vm515_vm10 = vcmask 1041408   ;;  %vm511_vm11 = vcmask 15360   ;;  %s1198_s7 = smov 33  }
  0x2b   :  { %1016 = vmatprep.subr.bf16.mxu0 %v1193_v0  ;;  %v133_v19 = vld [vmem:[#allocation5 + $0x78] sm:$0xff]  ;;  %v1023_v21 = vpack.c.bf16 %v46_v18, %v45_v16  ;;  %v47_v22 = vld [vmem:[#allocation5 + $0x40] sm:$0xff]  ;;  %v48_v24 = vld [vmem:[#allocation5 + $0x48] sm:$0xff]  ;;  %vm687_vm12 = vcmask 1045504   ;;  %vm683_vm14 = vcmask 244736   ;;  %vm767_vm15 = vcmask 23552  }
  0x2c   :  { %1030 = vmatpush3.bf16.msra.mxu1 %v1029_v14  ;;  %v1035_v23 = vpack.c.bf16 %v134_v20, %v133_v19  ;;  %v135_v25 = vld [vmem:[#allocation5 + $0x88] sm:$0xff]  ;;  %v136_v26 = vld [vmem:[#allocation5 + $0x90] sm:$0xff]  ;;  %v1026_v27 = vpack.c.bf16 %v48_v24, %v47_v22  ;;  %v137_v29 = vld [vmem:[#allocation5 + $0x98] sm:$0xff]  ;;  %s1199_s8 = smov [#allocation7]  }
  0x2d   :  { %1031 = vmatprep.subr.bf16.mxu1 %v1193_v0  ;;  %v1038_v28 = vpack.c.bf16 %v136_v26, %v135_v25  ;;  %v138_v30 = vld [vmem:[#allocation5 + $0xa0] sm:$0xff]  ;;  %v38_v31 = vld [vmem:[#allocation2] sm:$0xf]  ;;  %v139_v33 = vld [vmem:[#allocation5 + $0xa8] sm:$0xff]  ;;  %s780_s9 = sshll.u32 %s1199_s8, 4  ;;  %s781_s9 = int_to_ptr.vmem [resolvable:$true] %s780_s9 }
  0x2e   :  { %1018 = vmatpush3.bf16.msra.mxu0 %v1017_v7  ;;  %v1041_v32 = vpack.c.bf16 %v138_v30, %v137_v29  ;;  %v140_v34 = vld [vmem:[#allocation5 + $0xb0] sm:$0xff]  ;;  %v141_v36 = vld [vmem:[#allocation5 + $0xb8] sm:$0x1]  ;;  %v226_v37 = vld [vmem:[#allocation5 + $0xc8] sm:$0xff]  ;;  %s1161_s10 = scalar_lea.vmem %s781_s9, 64  ;;  %p1166_p3 = scmp.lt.s32.totalorder %s781_s9, %s781_s9 }
  0x2f   :  { %1019 = vmatprep.subr.bf16.mxu0 %v1193_v0  ;;  %v1044_v35 = vpack.c.bf16 %v140_v34, %v139_v33  ;;  %v227_v38 = vld [vmem:[#allocation5 + $0xd0] sm:$0xff]  ;;  %v228_v45 = vld [vmem:[#allocation5 + $0xd8] sm:$0xff]  ;;  %v229_v46 = vld [vmem:[#allocation5 + $0xe0] sm:$0xff]  ;;  %p1162_p2 = scmp.ne.s32.totalorder %s781_s9, %s1161_s10  ;;  %p1167_p4 = scmp.lt.s32.totalorder %s1161_s10, %s1161_s10 }
  0x30   :  { %1033 = vmatpush3.bf16.msra.mxu1 %v1032_v17  ;;  %v1047_v39 = vpack.c.bf16 %v227_v38, %v226_v37  ;;  %v790_v40 = vld [vmem:[#allocation5 + $0x50] ss:$0 sm:$0xff]  ;;  %v1050_v47 = vpack.c.bf16 %v229_v46, %v228_v45  ;;  %v230_v48 = vld [vmem:[#allocation5 + $0xe8] sm:$0xff]  ;;  %v311_v49 = vld [vmem:[#allocation5 + $0xf8] sm:$0xff] }
  0x31   :  { %1034 = vmatprep.subr.bf16.mxu1 %v1193_v0  ;;  %v312_v50 = vld [vmem:[#allocation5 + $0x100] sm:$0xff]  ;;  %v313_v51 = vld [vmem:[#allocation5 + $0x108] sm:$0xff]  ;;  %v314_v53 = vld [vmem:[#allocation5 + $0x110] sm:$0xff]  ;;  %p1168_p5 = por %p1167_p4, %p1166_p3 }
  0x32   :  { %1021 = vmatpush3.bf16.msra.mxu0 %v1020_v15  ;;  %v1053_v52 = vpack.c.bf16 %v312_v50, %v311_v49  ;;  %v1056_v54 = vpack.c.bf16 %v314_v53, %v313_v51  ;;  %v315_v55 = vld [vmem:[#allocation5 + $0x118] sm:$0xff]  ;;  %v316_v56 = vld [vmem:[#allocation5 + $0x120] sm:$0xff]  ;;  %v317_v63 = vld [vmem:[#allocation5 + $0x128] sm:$0xff] }
  0x33   :  { %1022 = vmatprep.subr.bf16.mxu0 %v1193_v0  ;;  %v1059_v57 = vpack.c.bf16 %v316_v56, %v315_v55  ;;  %v792_v58 = vld [vmem:[#allocation5 + $0xc0] ss:$0 sm:$0xff]  ;;  %v318_v2 = vld [vmem:[#allocation5 + $0x130] sm:$0xf]  ;;  %vm1277_vm7 = vmpackc.low %vm328_vm5, %vm1196_vm6  ;;  %p1169_p6 = pnand %p1168_p5, %p1162_p2 }
  0x34   :  { %1036 = vmatpush3.bf16.msra.mxu1 %v1035_v23  ;;  %v1062_v3 = vpack.c.bf16 %v318_v2, %v317_v63  ;;  %v795_v5 = vld [vmem:[#allocation5 + $0xf0] ss:$0 sm:$0xff]  ;;  %v410_v11 = vld [vmem:[#allocation5 + $0x158] sm:$0xff]  ;;  %v411_v13 = vld [vmem:[#allocation5 + $0x160] sm:$0xff] }
  0x35   :  { %1037 = vmatprep.subr.bf16.mxu1 %v1193_v0  ;;  %v409_v10 = vld [vmem:[#allocation5 + $0x150] sm:$0xff]  ;;  %v412_v14 = vld [vmem:[#allocation5 + $0x168] sm:$0xff]  ;;  %v414_v17 = vld [vmem:[#allocation5 + $0x178] sm:$0xff] }
  0x36   :  { %1024 = vmatpush3.bf16.msra.mxu0 %v1023_v21  ;;  %v1066_v12 = vpack.c.bf16 %v410_v11, %v409_v10  ;;  %v1069_v15 = vpack.c.bf16 %v412_v14, %v411_v13  ;;  %v413_v16 = vld [vmem:[#allocation5 + $0x170] sm:$0xff]  ;;  %v415_v19 = vld [vmem:[#allocation5 + $0x180] sm:$0xff]  ;;  %v416_v20 = vld [vmem:[#allocation5 + $0x188] sm:$0xf] }
  0x37   :  { %1025 = vmatprep.subr.bf16.mxu0 %v1193_v0  ;;  %v1072_v18 = vpack.c.bf16 %v414_v17, %v413_v16  ;;  %v1075_v21 = vpack.c.bf16 %v416_v20, %v415_v19  ;;  %v417_v22 = vld [vmem:[#allocation5 + $0x148] sm:$0x1]  ;;  %v797_v23 = vld [vmem:[#allocation5 + $0x138] ss:$0 sm:$0xff]  ;;  %v593_v45 = vld [vmem:[#allocation5 + $0x1b0] sm:$0xff] }
  0x38   :  { %1039 = vmatpush3.bf16.msra.mxu1 %v1038_v28  ;;  %1098 = vpush %v417_v22  ;;  %v596_v53 = vld [vmem:[#allocation5 + $0x1c8] sm:$0xff]  ;;  %v674_v56 = vld [vmem:[#allocation5 + $0x1d8] sm:$0xff]  ;;  %vm1096_vm13 = vmpackc.low %vm687_vm12, %vm1196_vm6 }
  0x39   :  { %1040 = vmatprep.subr.bf16.mxu1 %v1193_v0 }
  0x3a   :  { %1027 = vmatpush3.bf16.msra.mxu0 %v1026_v27  ;;  %v800_v27 = vld [vmem:[#allocation5 + $0x140] ss:$0 sm:$0xff] }
  0x3b   :  { %1046 = vmatprep.subr.bf16.mxu0 %v1193_v0 }
  0x3c   :  { %1042 = vmatpush3.bf16.msra.mxu1 %v1041_v32 }
  0x3d   :  { %896 = vmatmul.mubr.msk.f32.vlgmr.msra.gmra.mrb[0].mxu0 %vm54_vm1, %v38_v31  ;;  %1043 = vmatprep.subr.bf16.mxu1 %v1193_v0  ;;  %vm771_vm1 = vcmask 760832  }
  0x3e   :  { %937 = vmatprep.mubr.msk.f32.mxu0 %vm1194_vm0, %v1195_v1  ;;  %1048 = vmatpush3.bf16.msra.mxu0 %v1047_v39 }
  0x3f   :  { %1049 = vmatprep.subr.bf16.mxu0 %v1193_v0 }
  0x40   :  { %1045 = vmatpush3.bf16.msra.mxu1 %v1044_v35 }
  0x41   :  { %922 = vmatprep.subr.mxu1 %v1195_v1 }
  0x42   :  { %1051 = vmatpush3.bf16.msra.mxu0 %v1050_v47  ;;  %v594_v47 = vld [vmem:[#allocation5 + $0x1b8] sm:$0xff] }
  0x43   :  { %935 = vmatprep.subr.mxu0 %v1195_v1 }
  0x44   :  { %923 = vmatpush3.msk.msra.mxu1 %vm151_vm2, %v141_v36 }
  0x45   :  { %1052 = vmatprep.subr.bf16.mxu1 %v1193_v0 }
  0x46   :  { %936 = vmatpush3.msra.mxu0 %v230_v48  ;;  %v595_v48 = vld [vmem:[#allocation5 + $0x1c0] sm:$0xff] }
  0x47   :  { %1065 = vmatprep.subr.bf16.mxu0 %v1193_v0  ;;  %v1085_v49 = vpack.c.bf16 %v595_v48, %v594_v47 }
  0x69   :  { %s1099_s1 = spop %1098 }
  0x6a   :  { %v420_v30 = vstv %s1099_s1 }
 0x110   :  { %v124_v41 = vpop.f32.mrb[0].mxu0 }
 0x111   :  { %v125_v42 = vadd.f32 %v790_v40, %v124_v41  ;;  %v897_v43 = vpop.f32.mrb[1].mxu0  ;;  %v510_v40 = vld [vmem:[#allocation5 + $0x190] sm:$0x3]  ;;  %v590_v41 = vld [vmem:[#allocation5 + $0x198] sm:$0xff] }
 0x112   :  { %v592_v43 = vld [vmem:[#allocation5 + $0x1a8] sm:$0xff] }
 0x113   :  { %v128_v44 = vmax.f32 %v125_v42, 0.0  ;;  %v591_v42 = vld [vmem:[#allocation5 + $0x1a0] sm:$0xff]  ;;  %v1082_v46 = vpack.c.bf16 %v593_v45, %v592_v43 }
 0x115   :  { %925 = vmatmul.mubr.msk.f32.vlgmr.msra.gmra.mrb[0].mxu1 %vm147_vm3, %v128_v44  ;;  %v1079_v44 = vpack.c.bf16 %v591_v42, %v590_v41 }
 0x116   :  { %956 = vmatprep.mubr.msk.f32.mxu1 %vm1194_vm0, %v1195_v1  ;;  %1054 = vmatpush3.bf16.msra.mxu1 %v1053_v52 }
 0x117   :  { %1055 = vmatprep.subr.bf16.mxu1 %v1193_v0 }
 0x11a   :  { %1057 = vmatpush3.bf16.msra.mxu1 %v1056_v54  ;;  %v597_v54 = vld [vmem:[#allocation5 + $0x1d0] sm:$0xf] }
 0x11b   :  { %1058 = vmatprep.subr.bf16.mxu1 %v1193_v0  ;;  %v1088_v55 = vpack.c.bf16 %v597_v54, %v596_v53 }
 0x11e   :  { %1060 = vmatpush3.bf16.msra.mxu1 %v1059_v57  ;;  %v675_v57 = vld [vmem:[#allocation5 + $0x1e0] sm:$0xff] }
 0x11f   :  { %1061 = vmatprep.subr.bf16.mxu1 %v1193_v0 }
 0x122   :  { %1064 = vmatpush3.bf16.msk.msra.mxu1 %vm1277_vm7, %v1062_v3 }
 0x123   :  { %978 = vmatprep.subr.mxu1 %v1195_v1 }
 0x1e8   :  { %v221_v59 = vpop.f32.mrb[0].mxu1 }
 0x1e9   :  { %v222_v60 = vadd.f32 %v792_v58, %v221_v59  ;;  %v926_v61 = vpop.f32.mrb[1].mxu1  ;;  %v676_v58 = vld [vmem:[#allocation5 + $0x1e8] sm:$0xff]  ;;  %v1092_v59 = vpack.c.bf16 %v675_v57, %v674_v56 }
 0x1eb   :  { %v225_v62 = vmax.f32 %v222_v60, 0.0  ;;  %v677_v60 = vld [vmem:[#allocation5 + $0x1f0] sm:$0x3f] }
 0x1ec   :  { %v1095_v61 = vpack.c.bf16 %v677_v60, %v676_v58 }
 0x1ed   :  { %938 = vmatmul.mubr.msk.f32.vlgmr.msra.gmra.mrb[2].mxu0 %vm236_vm4, %v225_v62 }
 0x1ee   :  { %975 = vmatprep.mubr.msk.f32.mxu0 %vm1194_vm0, %v1195_v1  ;;  %1067 = vmatpush3.bf16.msra.mxu0 %v1066_v12 }
 0x1ef   :  { %1068 = vmatprep.subr.bf16.mxu0 %v1193_v0 }
 0x1f2   :  { %1070 = vmatpush3.bf16.msra.mxu0 %v1069_v15 }
 0x1f3   :  { %1071 = vmatprep.subr.bf16.mxu0 %v1193_v0 }
 0x1f6   :  { %1073 = vmatpush3.bf16.msra.mxu0 %v1072_v18 }
 0x1f7   :  { %1074 = vmatprep.subr.bf16.mxu0 %v1193_v0 }
 0x1fa   :  { %1077 = vmatpush3.bf16.msk.msra.mxu0 %vm1277_vm7, %v1075_v21 }
 0x1fb   :  { %1078 = vmatprep.subr.bf16.mxu0 %v1193_v0 }
 0x2c0   :  { %v306_v6 = vpop.f32.mrb[2].mxu0 }
 0x2c1   :  { %v307_v7 = vadd.f32 %v795_v5, %v306_v6  ;;  %v939_v8 = vpop.f32.mrb[3].mxu0 }
 0x2c3   :  { %v1284_v9 = vmax.f32 %v307_v7, 0.0 }
 0x2c5   :  { %957 = vmatmul.mubr.msk.f32.vlgmr.msra.gmra.mrb[2].mxu1 %vm324_vm8, %v1284_v9 }
 0x2c6   :  { %980 = vmatprep.mubr.msk.f32.mxu1 %vm1194_vm0, %v1195_v1  ;;  %979 = vmatpush3.msk.msra.mxu1 %vm515_vm10, %v510_v40 }
 0x2c7   :  { %1091 = vmatprep.subr.bf16.mxu1 %v1193_v0 }
 0x398   :  { %v398_v24 = vpop.f32.mrb[2].mxu1 }
 0x399   :  { %v399_v25 = vadd.f32 %v797_v23, %v398_v24  ;;  %v958_v26 = vpop.f32.mrb[3].mxu1 }
 0x39b   :  { %1111 = vtanh.f32 %v399_v25 }
 0x3a5   :  { %v1112_v28 = vpop.eup %1111 }
 0x3a6   :  { %v408_v29 = vmul.f32 %v1112_v28, %v800_v27 }
 0x3a8   :  { %976 = vmatmul.mubr.msk.f32.vlgmr.msra.gmra.mrb[4].mxu0 %vm324_vm8, %v408_v29 }
 0x3a9   :  { %999 = vmatprep.mubr.msk.f32.mxu0 %vm1194_vm0, %v1195_v1  ;;  %1080 = vmatpush3.bf16.msra.mxu0 %v1079_v44 }
 0x3aa   :  { %1081 = vmatprep.subr.bf16.mxu0 %v1193_v0 }
 0x3ad   :  { %1083 = vmatpush3.bf16.msra.mxu0 %v1082_v46 }
 0x3ae   :  { %1084 = vmatprep.subr.bf16.mxu0 %v1193_v0 }
 0x3b1   :  { %1086 = vmatpush3.bf16.msra.mxu0 %v1085_v49 }
 0x3b2   :  { %1087 = vmatprep.subr.bf16.mxu0 %v1193_v0 }
 0x3b5   :  { %1090 = vmatpush3.bf16.msk.msra.mxu0 %vm1277_vm7, %v1088_v55 }
 0x47b   :  { %v494_v31 = vpop.f32.mrb[4].mxu0 }
 0x47c   :  { %v495_v32 = vadd.f32 %v494_v31, %v420_v30  ;;  %v977_v33 = vpop.f32.mrb[5].mxu0 }
 0x47e   :  { %v499_v34 = vsel %vm498_vm9, %v495_v32, -inf }
 0x47f   :  { %500 = vmax.xlane.f32.xlu0 %v499_v34 }
 0x50c   :  { %v501_v35 = vpop.xlane.xlu0 %500 }
 0x50d   :  { %v502_v36 = vsub.f32 %v495_v32, %v501_v35 }
 0x50f   :  { %v503_v37 = vmul.f32 1.442695, %v502_v36 }
 0x511   :  { %1113 = vpow2.f32 %v503_v37 }
 0x51b   :  { %v1114_v38 = vpop.eup %1113 }
 0x51c   :  { %v505_v39 = vsel %vm498_vm9, %v1114_v38, 0.0 }
 0x51d   :  { %506 = vadd.xlane.f32.xlu0 %v505_v39 }
 0x5aa   :  { %v507_v50 = vpop.xlane.xlu0 %506 }
 0x5ab   :  { %1115 = vrcp.f32 %v507_v50 }
 0x5b5   :  { %v1116_v51 = vpop.eup %1115 }
 0x5b6   :  { %v509_v52 = vmul.f32 %v1116_v51, %v1114_v38 }
 0x5b8   :  { %981 = vmatmul.mubr.msk.f32.vlgmr.msra.gmra.mrb[4].mxu1 %vm511_vm11, %v509_v52 }
 0x5b9   :  { %1010 = vmatprep.mubr.msk.f32.mxu1 %vm1194_vm0, %v1195_v1  ;;  %1093 = vmatpush3.bf16.msra.mxu1 %v1092_v59  ;;  %vm769_vm0 = vcmask 269312  }
 0x5ba   :  { %1094 = vmatprep.subr.bf16.mxu1 %v1193_v0  ;;  %v807_v0 = vld [vmem:[#allocation5 + $0x1f8] ss:$0 sm:$0xff] }
 0x5bd   :  { %1097 = vmatpush3.bf16.msk.msra.mxu1 %vm1096_vm13, %v1095_v61 }
 0x68b   :  { %v585_v1 = vpop.f32.mrb[4].mxu1 }
 0x68c   :  { %v589_v62 = vmul.f32 %v585_v1, %v1284_v9  ;;  %v982_v63 = vpop.f32.mrb[5].mxu1 }
 0x68e   :  { %1000 = vmatmul.mubr.msk.f32.vlgmr.msra.gmra.mrb[6].mxu0 %vm324_vm8, %v589_v62 }
 0x761   :  { %v670_v2 = vpop.f32.mrb[6].mxu0 }
 0x762   :  { %761 = vrot.lane.b32.xlu1 %v670_v2, %s1197_s6  ;;  %v1001_v3 = vpop.f32.mrb[7].mxu0  ;;  %1011 = vmatmul.mubr.msk.f32.vlgmr.msra.gmra.mrb[6].mxu1 %vm683_vm14, %v670_v2 }
 0x766   :  { %764 = vrot.lane.b32.xlu1 %v1284_v9, %s1198_s7 }
 0x7d4   :  { %v762_v4 = vpop.permute.xlu1 %761 }
 0x7d8   :  { %v765_v8 = vpop.permute.xlu1 %764 }
 0x835   :  { %v757_v5 = vpop.f32.mrb[6].mxu1 }
 0x836   :  { %v758_v6 = vadd.f32 %v807_v0, %v757_v5  ;;  %v1012_v7 = vpop.f32.mrb[7].mxu1 }
 0x838   :  { %v768_v10 = vsel %vm767_vm15, %v758_v6, %v762_v4 }
 0x839   :  { %v770_v11 = vsel %vm769_vm0, %v768_v10, %v765_v8 }
 0x83a   :  { %v772_v12 = vsel %vm771_vm1, %v770_v11, 0.0 }
 0x83b   :  { %773 = vst [vmem:[#allocation7] sm:$0xf] %v772_v12 }
 0x83c   :  { %1172 = shalt.err (!%p1169_p6)
}
 0x83d   :  { %s1173_s13 = scalar_lea.hbm %s1326_s2, 64 }
 0x83e   :  { %p1174_p7 = scmp.ne.s32.totalorder %s1326_s2, %s1173_s13  ;;  %p1177_p8 = scmp.lt.u32.totalorder %s1173_s13, %s1326_s2 }
 0x840   :  { %p1179_p9 = pnand %p1177_p8, %p1174_p7 }
 0x842   :  { %1182 = shalt.err (!%p1179_p9)
}
 0x843   :  { %783 = dma.vmem_to_hbm [thread:$0]  %s781_s9, 64, %s1326_s2, [#allocation4]  }
 0x844   :  { %1187 = dma.done.wait [#allocation4], 64  }
 0x845   :  { %1188 = vsyncadd [#allocation4], 4294967232 }
 0x846   :  { %787 = vsyncpa [#allocation3], 1 }
 0x847   :  { %788 = vsyncpa [#allocation6], 1 }
 0x848   :  { %789 = vsyncpa [#allocation4], 1 }

</bundles_post_ra>
